<compile_context>
chip_gen: v7x
topology: tpu7x:2x2x1
jax: 0.10.0
libtpu: 0.0.40
codegen_flags: <defaults>
</compile_context>

<pallas_src>
import math

import jax
import jax.numpy as jnp
from jax.experimental import pallas as pl
from jax.experimental.pallas import tpu as pltpu


# ----------------------------- parameter / buffer setup (plain JAX glue) ----

def make_pe_buffer(d_model: int, max_len: int = 5000) -> jnp.ndarray:
    """Sinusoidal positional-encoding buffer, shape (max_len, 1, d_model)."""
    position = jnp.arange(0, max_len, dtype=jnp.float32)[:, None]          # (L, 1)
    div_term = jnp.exp(
        jnp.arange(0, d_model, 2, dtype=jnp.float32)
        * (-math.log(10000.0) / d_model)
    )
    pe = jnp.zeros((max_len, d_model), dtype=jnp.float32)
    pe = pe.at[:, 0::2].set(jnp.sin(position * div_term))
    pe = pe.at[:, 1::2].set(jnp.cos(position * div_term[: d_model // 2]))
    return pe[:, None, :]                                                   # (L, 1, D)


# ----------------------------------- Pallas kernels --------------------------

def _pe_add_kernel_lanedense(scale_ref, x_ref, pe_ref, o_ref):
    # Fast path, requires D % 128 == 0.
    # scale_ref: SMEM (1,) f32
    # x_ref : VMEM tile (ts, B*D)   lane-dense 2D view of x
    # pe_ref: VMEM tile (ts, D)
    # o_ref : VMEM tile (ts, B*D)
    s = scale_ref[0]
    d = pe_ref.shape[-1]
    nrep = x_ref.shape[-1] // d              # == B, static at trace time
    pe_scaled = s * pe_ref[...].astype(jnp.float32)   # (ts, D) f32, once per tile
    for b in range(nrep):                    # static unroll; each store is a
        sl = slice(b * d, (b + 1) * d)       # 128-aligned, full-width vst
        o_ref[:, sl] = (x_ref[:, sl].astype(jnp.float32) + pe_scaled).astype(o_ref.dtype)


def _pe_add_kernel_bcast(scale_ref, x_ref, pe_ref, o_ref):
    # Fallback path for D % 128 != 0 (small d_model): broadcast in vregs.
    # x_ref : VMEM tile (ts, B, D) ; pe_ref: VMEM tile (ts, 1, D)
    s = scale_ref[0]
    x = x_ref[...].astype(jnp.float32)
    pe = pe_ref[...].astype(jnp.float32)
    o_ref[...] = (x + s * pe).astype(o_ref.dtype)


# ----------------------------------- tiling heuristics -----------------------

def _vmem_budget_and_tile_target():
    """(vmem_limit_bytes, target_x_tile_bytes), generation aware."""
    vmem_bytes = None
    try:
        info = pltpu.get_tpu_info()
        vmem_bytes = getattr(info, "vmem_capacity_bytes", None)
    except Exception:
        vmem_bytes = None
    if vmem_bytes is None:
        vmem_bytes = 64 * 1024 * 1024        # conservative: assume v7x-class
    if vmem_bytes <= 80 * 1024 * 1024:
        # v7x-class: 64 MiB physical, ~3.2 TB/s/TC HBM -> bigger tiles to
        # amortize per-step overhead; double-buffered x+out+pe stays <~34 MiB.
        return 48 * 1024 * 1024, 8 * 1024 * 1024
    # v5e/v6e-class: 128 MiB physical; 4 MiB tiles are past the roofline knee.
    return 64 * 1024 * 1024, 4 * 1024 * 1024


def _pick_seq_tile(seq_len: int, row_bytes: int, target_bytes: int) -> int:
    """Rows per tile: ~target_bytes of x, multiple of 8, with grid >= 2 if possible."""
    rows = max(8, (target_bytes // max(row_bytes, 1)) // 8 * 8)
    if rows >= seq_len:
        # Whole x fits in one target-sized tile: still split into >= 2 grid
        # steps (8-row aligned) so both v7x TensorCores take a shard and the
        # pipeline double-buffers.  Impossible below 16 rows.
        half = (-(-seq_len // 2) + 7) // 8 * 8
        if 8 <= half < seq_len:
            return half
        return seq_len
    return rows


# ----------------------------------- wrapper ---------------------------------

def positional_encoding_forward(x: jnp.ndarray,
                                pe: jnp.ndarray,
                                scale: jnp.ndarray,
                                *,
                                donate_x: bool = False) -> jnp.ndarray:
    """x: (S, B, D); pe: (max_len, 1, D); scale: (1,). Eval-mode forward."""
    S, B, D = x.shape
    max_len = pe.shape[0]
    assert S <= max_len, "sequence longer than positional-encoding buffer"

    scale_smem = jnp.reshape(scale.astype(jnp.float32), (1,))
    vmem_limit, target_tile = _vmem_budget_and_tile_target()

    itemsize = jnp.dtype(x.dtype).itemsize
    ts = _pick_seq_tile(S, B * D * itemsize, target_tile)
    grid = (pl.cdiv(S, ts),)

    compiler_params = pltpu.CompilerParams(
        dimension_semantics=("parallel",),   # megacore shard on v7x
        vmem_limit_bytes=vmem_limit,
    )
    io_alias = {1: 0} if donate_x else {}    # x (operand 1) -> output 0

    if D % 128 == 0:
        # Lane-dense fast path: free contiguous reshapes, unmasked stores.
        x2 = x.reshape(S, B * D)
        pe2 = pe.reshape(max_len, D)
        pe_arg = pe2 if ts % 8 == 0 else pe2[:S]   # keep (8,128) rule happy
        out2 = pl.pallas_call(
            _pe_add_kernel_lanedense,
            out_shape=jax.ShapeDtypeStruct((S, B * D), x.dtype),
            grid_spec=pltpu.PrefetchScalarGridSpec(
                num_scalar_prefetch=0,
                grid=grid,
                in_specs=[
                    pl.BlockSpec(memory_space=pltpu.MemorySpace.SMEM),   # scale
                    pl.BlockSpec((ts, B * D), lambda i: (i, 0)),         # x
                    pl.BlockSpec((ts, D), lambda i: (i, 0)),             # pe
                ],
                out_specs=pl.BlockSpec((ts, B * D), lambda i: (i, 0)),
            ),
            compiler_params=compiler_params,
            input_output_aliases=io_alias,
        )(scale_smem, x2, pe_arg)
        return out2.reshape(S, B, D)

    # Fallback (D not a multiple of 128): (ts, B, D) blocks, in-vreg broadcast.
    # Stores are masked (lane width < 128) — unavoidable at this d_model.
    pe_arg = pe if ts % 8 == 0 else pe[:S]
    return pl.pallas_call(
        _pe_add_kernel_bcast,
        out_shape=jax.ShapeDtypeStruct((S, B, D), x.dtype),
        grid_spec=pltpu.PrefetchScalarGridSpec(
            num_scalar_prefetch=0,
            grid=grid,
            in_specs=[
                pl.BlockSpec(memory_space=pltpu.MemorySpace.SMEM),       # scale
                pl.BlockSpec((ts, B, D), lambda i: (i, 0, 0)),           # x
                pl.BlockSpec((ts, 1, D), lambda i: (i, 0, 0)),           # pe
            ],
            out_specs=pl.BlockSpec((ts, B, D), lambda i: (i, 0, 0)),
        ),
        compiler_params=compiler_params,
        input_output_aliases=io_alias,
    )(scale_smem, x, pe_arg)


# ----------------------------------------- main ------------------------------

if __name__ == "__main__":
    MAX_LEN = 64
    key = jax.random.PRNGKey(0)
    k1, k2 = jax.random.split(key)
    scale = jnp.ones((1,), dtype=jnp.float32)    # nn.Parameter(torch.ones(1))

    # Case 1: module-sized small shape (seq=8, batch=2, d_model=32) ->
    # D % 128 != 0, exercises the broadcast fallback path.
    S, B, D = 8, 2, 32
    x = jax.random.normal(k1, (S, B, D), dtype=jnp.float32)
    pe = make_pe_buffer(D, MAX_LEN)
    out = jax.block_until_ready(positional_encoding_forward(x, pe, scale))
    ref = x + scale[0] * pe[:S]
    assert out.shape == (S, B, D)
    assert jnp.allclose(out, ref, atol=1e-6), "broadcast-path mismatch"

    # Case 2: lane-dense fast path (d_model multiple of 128) -> unmasked
    # full-width stores and a >=2-step grid (ts is capped at ceil(S/2)).
    S2, B2, D2 = 16, 2, 128
    x2 = jax.random.normal(k2, (S2, B2, D2), dtype=jnp.float32)
    pe2 = make_pe_buffer(D2, MAX_LEN)
    out2 = jax.block_until_ready(positional_encoding_forward(x2, pe2, scale))
    ref2 = x2 + scale[0] * pe2[:S2]
    assert out2.shape == (S2, B2, D2)
    assert jnp.allclose(out2, ref2, atol=1e-6), "lane-dense-path mismatch"

    print("KERNEL_OK")
</pallas_src>

<mosaic_0001>
module attributes {stable_mosaic.version = 11 : i64} {
  func.func @_pe_add_kernel_bcast(%arg0: i32, %arg1: memref<1xf32, #tpu.memory_space<smem>>, %arg2: memref<8x2x32xf32, #tpu.memory_space<vmem>>, %arg3: memref<8x1x32xf32, #tpu.memory_space<vmem>>, %arg4: memref<8x2x32xf32, #tpu.memory_space<vmem>>) attributes {dimension_semantics = [#tpu.dimension_semantics<parallel>], iteration_bounds = array<i64: 1>, scalar_prefetch = 0 : i64, scratch_operands = 0 : i64, tpu.core_type = #tpu.core_type<tc>, window_params = [{transform_indices = @transform_0, window_bounds = array<i64: 1>}, {transform_indices = @transform_1, window_bounds = array<i64: 8, 2, 32>}, {transform_indices = @transform_2, window_bounds = array<i64: 8, 1, 32>}, {transform_indices = @transform_3, window_bounds = array<i64: 8, 2, 32>}]} {
    %c0 = arith.constant 0 : index
    %0 = memref.load %arg1[%c0] : memref<1xf32, #tpu.memory_space<smem>>
    %c0_0 = arith.constant 0 : index
    %c0_1 = arith.constant 0 : index
    %c0_2 = arith.constant 0 : index
    %1 = vector.load %arg2[%c0_0, %c0_1, %c0_2] : memref<8x2x32xf32, #tpu.memory_space<vmem>>, vector<8x2x32xf32>
    %c0_3 = arith.constant 0 : index
    %c0_4 = arith.constant 0 : index
    %c0_5 = arith.constant 0 : index
    %2 = vector.load %arg3[%c0_3, %c0_4, %c0_5] : memref<8x1x32xf32, #tpu.memory_space<vmem>>, vector<8x1x32xf32>
    %3 = vector.broadcast %0 : f32 to vector<8x1x32xf32>
    %4 = arith.mulf %3, %2 : vector<8x1x32xf32>
    %5 = vector.broadcast %4 : vector<8x1x32xf32> to vector<8x2x32xf32>
    %6 = arith.addf %1, %5 : vector<8x2x32xf32>
    %c0_6 = arith.constant 0 : index
    %c0_7 = arith.constant 0 : index
    %c0_8 = arith.constant 0 : index
    %7 = vector.load %arg4[%c0_6, %c0_7, %c0_8] : memref<8x2x32xf32, #tpu.memory_space<vmem>>, vector<8x2x32xf32>
    tpu.vector_store %arg4[%c0_6, %c0_7, %c0_8], %6 {strides = array<i32>} : memref<8x2x32xf32, #tpu.memory_space<vmem>>, vector<8x2x32xf32>,
    return
  }
  func.func @transform_0(%arg0: i32) -> i32 {
    %c0_i32 = arith.constant 0 : i32
    %c0_i32_0 = arith.constant 0 : i32
    return %c0_i32 : i32
  }
  func.func @transform_1(%arg0: i32) -> (i32, i32, i32) {
    %c0_i32 = arith.constant 0 : i32
    %c0_i32_0 = arith.constant 0 : i32
    %c0_i32_1 = arith.constant 0 : i32
    return %arg0, %c0_i32, %c0_i32_0 : i32, i32, i32
  }
  func.func @transform_2(%arg0: i32) -> (i32, i32, i32) {
    %c0_i32 = arith.constant 0 : i32
    %c0_i32_0 = arith.constant 0 : i32
    %c0_i32_1 = arith.constant 0 : i32
    return %arg0, %c0_i32, %c0_i32_0 : i32, i32, i32
  }
  func.func @transform_3(%arg0: i32) -> (i32, i32, i32) {
    %c0_i32 = arith.constant 0 : i32
    %c0_i32_0 = arith.constant 0 : i32
    %c0_i32_1 = arith.constant 0 : i32
    return %arg0, %c0_i32, %c0_i32_0 : i32, i32, i32
  }
}

</mosaic_0001>

<bundles_post_ra>
// kernel: tpu_custom_call.1
= control target key start
LH: loop header
LB: loop body
LE: loop exit
PB: predicated region body
PF: predicated region fallthrough
CT: control target
= control target key end

     0   :  { %v50_v2 = vlaneseq  ;;  %vm98_vm0 = vcmask 254976   ;;  %s244_s0 = inlined_call_operand.<no memory space> [shape: f32[1], index: 0, kind: input, shape index: {}]   ;;  %s245_s1 = inlined_call_operand.vmem [shape: f32[8,2,32], index: 1, kind: input, shape index: {}]   ;;  %s246_s2 = inlined_call_operand.vmem [shape: f32[64,1,32], index: 2, kind: input, shape index: {}]   ;;  %s247_s3 = inlined_call_operand.hbm [shape: f32[8,2,32], index: 3, kind: output, shape index: {}]  }
   0x1   :  { %v25_v0 = vld [vmem:[%s246_s2] sm:$0x1]  ;;  %v33_v1 = vstv %s244_s0  ;;  %v26_v3 = vld [vmem:[%s246_s2 + $0x1] sm:$0x1]  ;;  %v27_v7 = vld [vmem:[%s246_s2 + $0x2] sm:$0x1] }
   0x2   :  { %v34_v4 = vmul.f32 %v33_v1, %v25_v0  ;;  %v51_v5 = vshrl.u32 %v50_v2, 7  ;;  %v35_v6 = vmul.f32 %v33_v1, %v26_v3  ;;  %v17_v8 = vld [vmem:[%s245_s1] sm:$0x3]  ;;  %v18_v9 = vld [vmem:[%s245_s1 + $0x2] sm:$0x3]  ;;  %v36_v10 = vmul.f32 %v33_v1, %v27_v7 }
   0x3   :  { %v28_v11 = vld [vmem:[%s246_s2 + $0x3] sm:$0x1]  ;;  %v29_v12 = vld [vmem:[%s246_s2 + $0x4] sm:$0x1]  ;;  %v30_v17 = vld [vmem:[%s246_s2 + $0x5] sm:$0x1] }
   0x4   :  { %v52_v13 = vsub.s32 0, %v51_v5  ;;  %v19_v14 = vld [vmem:[%s245_s1 + $0x4] sm:$0x3]  ;;  %v37_v15 = vmul.f32 %v33_v1, %v28_v11  ;;  %v38_v16 = vmul.f32 %v33_v1, %v29_v12  ;;  %v20_v18 = vld [vmem:[%s245_s1 + $0x6] sm:$0x3]  ;;  %v39_v20 = vmul.f32 %v33_v1, %v30_v17 }
   0x5   :  { %v21_v19 = vld [vmem:[%s245_s1 + $0x8] sm:$0x3]  ;;  %v31_v21 = vld [vmem:[%s246_s2 + $0x6] sm:$0x1]  ;;  %v22_v26 = vld [vmem:[%s245_s1 + $0xa] sm:$0x3] }
   0x6   :  { %v53_v22 = vrot.slane %v34_v4, %v52_v13  ;;  %v57_v23 = vrot.slane %v35_v6, %v52_v13  ;;  %v61_v24 = vrot.slane %v36_v10, %v52_v13  ;;  %v65_v25 = vrot.slane %v37_v15, %v52_v13  ;;  %v32_v27 = vld [vmem:[%s246_s2 + $0x7] sm:$0x1] }
   0x7   :  { %9 = vsyncpa [#allocation4], 0  ;;  %v69_v28 = vrot.slane %v38_v16, %v52_v13  ;;  %v73_v29 = vrot.slane %v39_v20, %v52_v13  ;;  %v40_v30 = vmul.f32 %v33_v1, %v31_v21  ;;  %v41_v31 = vmul.f32 %v33_v1, %v32_v27  ;;  %s150_s14 = smov [#allocation3]   ;;  %v23_v36 = vld [vmem:[%s245_s1 + $0xc] sm:$0x3] }
   0x8   :  { %s112_s15 = sshll.u32 %s150_s14, 4  ;;  %v90_v32 = vadd.f32 %v53_v22, %v17_v8  ;;  %v91_v33 = vadd.f32 %v57_v23, %v18_v9  ;;  %v92_v34 = vadd.f32 %v61_v24, %v19_v14  ;;  %v93_v35 = vadd.f32 %v65_v25, %v20_v18  ;;  %v24_v37 = vld [vmem:[%s245_s1 + $0xe] sm:$0x3]  ;;  %s113_s15 = int_to_ptr.vmem [resolvable:$true] %s112_s15 }
   0x9   :  { %v94_v38 = vadd.f32 %v69_v28, %v21_v19  ;;  %v95_v39 = vadd.f32 %v73_v29, %v22_v26  ;;  %v77_v40 = vrot.slane %v40_v30, %v52_v13  ;;  %v81_v41 = vrot.slane %v41_v31, %v52_v13  ;;  %s126_s1 = scalar_lea.vmem %s113_s15, 256  ;;  %p131_p1 = scmp.lt.s32.totalorder %s113_s15, %s113_s15 }
   0xa   :  { %99 = vst.msk [vmem:[#allocation3] sm:$0x3] %vm98_vm0, %v90_v32  ;;  %100 = vst.msk [vmem:[#allocation3 + $0x2] sm:$0x3] %vm98_vm0, %v91_v33  ;;  %p127_p0 = scmp.ne.s32.totalorder %s113_s15, %s126_s1  ;;  %p132_p2 = scmp.lt.s32.totalorder %s126_s1, %s126_s1 }
   0xb   :  { %101 = vst.msk [vmem:[#allocation3 + $0x4] sm:$0x3] %vm98_vm0, %v92_v34  ;;  %102 = vst.msk [vmem:[#allocation3 + $0x6] sm:$0x3] %vm98_vm0, %v93_v35  ;;  %v96_v42 = vadd.f32 %v77_v40, %v23_v36  ;;  %v97_v43 = vadd.f32 %v81_v41, %v24_v37 }
   0xc   :  { %103 = vst.msk [vmem:[#allocation3 + $0x8] sm:$0x3] %vm98_vm0, %v94_v38  ;;  %104 = vst.msk [vmem:[#allocation3 + $0xa] sm:$0x3] %vm98_vm0, %v95_v39  ;;  %p133_p3 = por %p132_p2, %p131_p1 }
   0xd   :  { %105 = vst.msk [vmem:[#allocation3 + $0xc] sm:$0x3] %vm98_vm0, %v96_v42  ;;  %106 = vst.msk [vmem:[#allocation3 + $0xe] sm:$0x3] %vm98_vm0, %v97_v43 }
   0xe   :  { %p134_p4 = pnand %p133_p3, %p127_p0 }
  0x10   :  { %137 = shalt.err (!%p134_p4)
}
  0x11   :  { %s138_s21 = scalar_lea.hbm %s247_s3, 256 }
  0x12   :  { %p139_p5 = scmp.ne.s32.totalorder %s247_s3, %s138_s21  ;;  %p142_p6 = scmp.lt.u32.totalorder %s138_s21, %s247_s3 }
  0x14   :  { %p144_p7 = pnand %p142_p6, %p139_p5 }
  0x16   :  { %147 = shalt.err (!%p144_p7)
}
  0x17   :  { %s151_s25 = smov 32   ;;  %s152_s26 = smov 2  }
  0x18   :  { %118 = dma.vmem_to_hbm [thread:$0]  %s113_s15, 256, %s247_s3, [#allocation4], %s151_s25, %s151_s25, %s152_s26  }
  0x19   :  { %148 = dma.done.wait [#allocation4], 256  }
  0x1a   :  { %149 = vsyncadd [#allocation4], 4294967040 }
  0x1b   :  { %122 = vsyncpa [#allocation4], 1 }

</bundles_post_ra>
